<compile_context>
chip_gen: v7x
topology: tpu7x:2x2x1
jax: 0.10.0
libtpu: 0.0.40
codegen_flags: <defaults>
</compile_context>

<pallas_src>
import functools

import jax
import jax.numpy as jnp
from jax.experimental import pallas as pl
from jax.experimental.pallas import tpu as pltpu  # noqa: F401  (TPU backend)

HIDDEN_SIZE = 32
INPUT_SIZE = 1
OUTPUT_SIZE = 1


def _rnn_kernel(x_ref,       # [T*Bp, I]  time-major, batch zero-padded to Bp
                w_ih_ref,    # [I, H]     (W_ih transposed)
                w_hh_ref,    # [H, H]     (W_hh transposed)
                b_comb_ref,  # [1, H]     (b_ih + b_hh, pre-summed)
                h_out_ref,   # [Bp, H]    last hidden state (lane-dense output)
                *, T, Bp, I):
    # Hoisted input projection. For I == 1 this is an outer product, so run it
    # on the VPU as a broadcast multiply instead of pushing an almost-empty
    # K=1 tile through the MXU (saves MXU fill/drain + vpop on the pre-loop
    # path and keeps the MXU free for the recurrence).
    if I == 1:
        xw = x_ref[...] * w_ih_ref[...] + b_comb_ref[...]           # [T*Bp, H]
    else:
        xw = (jnp.dot(x_ref[...], w_ih_ref[...],
                      preferred_element_type=jnp.float32)
              + b_comb_ref[...])                                     # [T*Bp, H]

    w_hh = w_hh_ref[...]  # [H, H], loaded once; Mosaic keeps it VMEM/vreg-resident.

    # Statically unrolled recurrence (T known and small); h stays in vregs.
    # Bp is a multiple of 8, so every slice below starts on a sublane-tile
    # boundary -> zero-cost whole-vreg views inside the serial h-chain.
    # h_0 = 0  =>  h_1 = tanh(xw[0] + 0 @ W_hh) = tanh(xw[0]).
    h = jnp.tanh(xw[0:Bp, :])
    for t in range(1, T):
        h = jnp.tanh(xw[t * Bp:(t + 1) * Bp, :]
                     + jnp.dot(h, w_hh, preferred_element_type=jnp.float32))
    # NOTE: past T ~ 16 switch to lax.fori_loop(..., unroll=4..8) to bound
    # vreg live ranges; at H >= 128 cast h / w_hh to bf16 for the MXU path.

    h_out_ref[...] = h.astype(h_out_ref.dtype)


def rnn_forward(x, params):
    """x: [B, T, INPUT_SIZE] (batch_first, like PyTorch). Returns [B, OUTPUT_SIZE]."""
    w_ih, w_hh, b_ih, b_hh, w_fc, b_fc = params
    B, T, I = x.shape
    H = w_ih.shape[0]

    # Pad batch to a sublane multiple (8): aligned per-step xw slices and a
    # fully fed MXU sublane dimension in the recurrent matmul.
    Bp = max(8, -(-B // 8) * 8)
    x_tm = jnp.transpose(x, (1, 0, 2))                       # [T, B, I]
    x_tm = jnp.pad(x_tm, ((0, 0), (0, Bp - B), (0, 0)))      # [T, Bp, I]
    x_flat = x_tm.reshape(T * Bp, I)                         # [T*Bp, I]

    w_ih_t = w_ih.T                                          # [I, H]
    w_hh_t = w_hh.T                                          # [H, H]
    b_comb = (b_ih + b_hh).reshape(1, H)                     # folded bias

    full = lambda shape: pl.BlockSpec(shape, lambda: tuple(0 for _ in shape))
    kernel = functools.partial(_rnn_kernel, T=T, Bp=Bp, I=I)

    # Kernel returns the lane-dense last hidden state [Bp, H]; the tiny H -> 1
    # fc head stays in XLA (fused, effectively free) so the kernel epilogue
    # avoids a degenerate N=1 MXU op and 1-lane masked stores.
    # TODO(synk): for realistic batch sizes add a leading "parallel" batch grid
    # axis (2 TCs on v7x + double-buffered x DMA) and chunk the hoisted
    # [T*Bp, H] intermediate over T to respect v7x's 64 MiB VMEM.
    h_last = pl.pallas_call(
        kernel,
        out_shape=jax.ShapeDtypeStruct((Bp, H), jnp.float32),
        grid=(),
        in_specs=[
            full((T * Bp, I)),
            full((I, H)),
            full((H, H)),
            full((1, H)),
        ],
        out_specs=full((Bp, H)),
    )(x_flat, w_ih_t, w_hh_t, b_comb)

    # Drop padded batch rows (the recurrence is row-independent, so padded
    # rows never contaminate real rows) and apply the fc head.
    return h_last[:B] @ w_fc.T + b_fc


def init_params(key, input_size, hidden_size, output_size):
    # Deterministic init mirroring nn.RNN / nn.Linear parameter shapes
    # (uniform(-1/sqrt(H), 1/sqrt(H)) like PyTorch's default).
    ks = jax.random.split(key, 6)
    bound = 1.0 / jnp.sqrt(hidden_size)
    w_ih = jax.random.uniform(ks[0], (hidden_size, input_size), jnp.float32,
                              -bound, bound)
    w_hh = jax.random.uniform(ks[1], (hidden_size, hidden_size), jnp.float32,
                              -bound, bound)
    b_ih = jax.random.uniform(ks[2], (hidden_size,), jnp.float32, -bound, bound)
    b_hh = jax.random.uniform(ks[3], (hidden_size,), jnp.float32, -bound, bound)
    w_fc = jax.random.uniform(ks[4], (output_size, hidden_size), jnp.float32,
                              -bound, bound)
    b_fc = jax.random.uniform(ks[5], (output_size,), jnp.float32, -bound, bound)
    return (w_ih, w_hh, b_ih, b_hh, w_fc, b_fc)


def rnn_reference(x, params):
    """Pure-JAX reference of the PyTorch forward for validation."""
    w_ih, w_hh, b_ih, b_hh, w_fc, b_fc = params
    B, T, _ = x.shape
    h = jnp.zeros((B, w_ih.shape[0]), jnp.float32)
    for t in range(T):
        h = jnp.tanh(x[:, t, :] @ w_ih.T + b_ih + h @ w_hh.T + b_hh)
    return h @ w_fc.T + b_fc


if __name__ == "__main__":
    key = jax.random.PRNGKey(0)
    k_x, k_p = jax.random.split(key)

    B, T = 2, 8
    x = jax.random.normal(k_x, (B, T, INPUT_SIZE), jnp.float32)
    params = init_params(k_p, INPUT_SIZE, HIDDEN_SIZE, OUTPUT_SIZE)

    out = rnn_forward(x, params)
    out = jax.block_until_ready(out)

    ref = rnn_reference(x, params)
    assert out.shape == (B, OUTPUT_SIZE)
    assert jnp.allclose(out, ref, atol=1e-5, rtol=1e-5), (out, ref)

    print("KERNEL_OK")
</pallas_src>

<mosaic_0001>
module attributes {stable_mosaic.version = 11 : i64} {
  func.func @_rnn_kernel(%arg0: memref<64x1xf32, #tpu.memory_space<vmem>>, %arg1: memref<1x32xf32, #tpu.memory_space<vmem>>, %arg2: memref<32x32xf32, #tpu.memory_space<vmem>>, %arg3: memref<1x32xf32, #tpu.memory_space<vmem>>, %arg4: memref<8x32xf32, #tpu.memory_space<vmem>>) attributes {dimension_semantics = [], scalar_prefetch = 0 : i64, scratch_operands = 0 : i64, tpu.core_type = #tpu.core_type<tc>} {
    %c0 = arith.constant 0 : index
    %c0_0 = arith.constant 0 : index
    %0 = vector.load %arg0[%c0, %c0_0] : memref<64x1xf32, #tpu.memory_space<vmem>>, vector<64x1xf32>
    %c0_1 = arith.constant 0 : index
    %c0_2 = arith.constant 0 : index
    %1 = vector.load %arg1[%c0_1, %c0_2] : memref<1x32xf32, #tpu.memory_space<vmem>>, vector<1x32xf32>
    %2 = vector.broadcast %0 : vector<64x1xf32> to vector<64x32xf32>
    %3 = vector.broadcast %1 : vector<1x32xf32> to vector<64x32xf32>
    %4 = arith.mulf %2, %3 : vector<64x32xf32>
    %c0_3 = arith.constant 0 : index
    %c0_4 = arith.constant 0 : index
    %5 = vector.load %arg3[%c0_3, %c0_4] : memref<1x32xf32, #tpu.memory_space<vmem>>, vector<1x32xf32>
    %6 = vector.broadcast %5 : vector<1x32xf32> to vector<64x32xf32>
    %7 = arith.addf %4, %6 : vector<64x32xf32>
    %c0_5 = arith.constant 0 : index
    %c0_6 = arith.constant 0 : index
    %8 = vector.load %arg2[%c0_5, %c0_6] : memref<32x32xf32, #tpu.memory_space<vmem>>, vector<32x32xf32>
    %9 = vector.extract_strided_slice %7 {offsets = [0, 0], sizes = [8, 32], strides = [1, 1]} : vector<64x32xf32> to vector<8x32xf32>
    %10 = math.tanh %9 : vector<8x32xf32>
    %11 = vector.extract_strided_slice %7 {offsets = [8, 0], sizes = [8, 32], strides = [1, 1]} : vector<64x32xf32> to vector<8x32xf32>
    %cst = arith.constant dense<0.000000e+00> : vector<8x32xf32>
    %12 = tpu.matmul %10, %8, %cst {dimension_numbers = #tpu.dot_dimension_numbers<[1], [0], [0], [1], [0, 0, 1, 1], [], []>} : vector<8x32xf32>, vector<32x32xf32>, vector<8x32xf32> -> vector<8x32xf32>
    %13 = arith.addf %11, %12 : vector<8x32xf32>
    %14 = math.tanh %13 : vector<8x32xf32>
    %15 = vector.extract_strided_slice %7 {offsets = [16, 0], sizes = [8, 32], strides = [1, 1]} : vector<64x32xf32> to vector<8x32xf32>
    %cst_7 = arith.constant dense<0.000000e+00> : vector<8x32xf32>
    %16 = tpu.matmul %14, %8, %cst_7 {dimension_numbers = #tpu.dot_dimension_numbers<[1], [0], [0], [1], [0, 0, 1, 1], [], []>} : vector<8x32xf32>, vector<32x32xf32>, vector<8x32xf32> -> vector<8x32xf32>
    %17 = arith.addf %15, %16 : vector<8x32xf32>
    %18 = math.tanh %17 : vector<8x32xf32>
    %19 = vector.extract_strided_slice %7 {offsets = [24, 0], sizes = [8, 32], strides = [1, 1]} : vector<64x32xf32> to vector<8x32xf32>
    %cst_8 = arith.constant dense<0.000000e+00> : vector<8x32xf32>
    %20 = tpu.matmul %18, %8, %cst_8 {dimension_numbers = #tpu.dot_dimension_numbers<[1], [0], [0], [1], [0, 0, 1, 1], [], []>} : vector<8x32xf32>, vector<32x32xf32>, vector<8x32xf32> -> vector<8x32xf32>
    %21 = arith.addf %19, %20 : vector<8x32xf32>
    %22 = math.tanh %21 : vector<8x32xf32>
    %23 = vector.extract_strided_slice %7 {offsets = [32, 0], sizes = [8, 32], strides = [1, 1]} : vector<64x32xf32> to vector<8x32xf32>
    %cst_9 = arith.constant dense<0.000000e+00> : vector<8x32xf32>
    %24 = tpu.matmul %22, %8, %cst_9 {dimension_numbers = #tpu.dot_dimension_numbers<[1], [0], [0], [1], [0, 0, 1, 1], [], []>} : vector<8x32xf32>, vector<32x32xf32>, vector<8x32xf32> -> vector<8x32xf32>
    %25 = arith.addf %23, %24 : vector<8x32xf32>
    %26 = math.tanh %25 : vector<8x32xf32>
    %27 = vector.extract_strided_slice %7 {offsets = [40, 0], sizes = [8, 32], strides = [1, 1]} : vector<64x32xf32> to vector<8x32xf32>
    %cst_10 = arith.constant dense<0.000000e+00> : vector<8x32xf32>
    %28 = tpu.matmul %26, %8, %cst_10 {dimension_numbers = #tpu.dot_dimension_numbers<[1], [0], [0], [1], [0, 0, 1, 1], [], []>} : vector<8x32xf32>, vector<32x32xf32>, vector<8x32xf32> -> vector<8x32xf32>
    %29 = arith.addf %27, %28 : vector<8x32xf32>
    %30 = math.tanh %29 : vector<8x32xf32>
    %31 = vector.extract_strided_slice %7 {offsets = [48, 0], sizes = [8, 32], strides = [1, 1]} : vector<64x32xf32> to vector<8x32xf32>
    %cst_11 = arith.constant dense<0.000000e+00> : vector<8x32xf32>
    %32 = tpu.matmul %30, %8, %cst_11 {dimension_numbers = #tpu.dot_dimension_numbers<[1], [0], [0], [1], [0, 0, 1, 1], [], []>} : vector<8x32xf32>, vector<32x32xf32>, vector<8x32xf32> -> vector<8x32xf32>
    %33 = arith.addf %31, %32 : vector<8x32xf32>
    %34 = math.tanh %33 : vector<8x32xf32>
    %35 = vector.extract_strided_slice %7 {offsets = [56, 0], sizes = [8, 32], strides = [1, 1]} : vector<64x32xf32> to vector<8x32xf32>
    %cst_12 = arith.constant dense<0.000000e+00> : vector<8x32xf32>
    %36 = tpu.matmul %34, %8, %cst_12 {dimension_numbers = #tpu.dot_dimension_numbers<[1], [0], [0], [1], [0, 0, 1, 1], [], []>} : vector<8x32xf32>, vector<32x32xf32>, vector<8x32xf32> -> vector<8x32xf32>
    %37 = arith.addf %35, %36 : vector<8x32xf32>
    %38 = math.tanh %37 : vector<8x32xf32>
    %c0_13 = arith.constant 0 : index
    %c0_14 = arith.constant 0 : index
    %39 = vector.load %arg4[%c0_13, %c0_14] : memref<8x32xf32, #tpu.memory_space<vmem>>, vector<8x32xf32>
    tpu.vector_store %arg4[%c0_13, %c0_14], %38 {strides = array<i32>} : memref<8x32xf32, #tpu.memory_space<vmem>>, vector<8x32xf32>,
    return
  }
}

</mosaic_0001>

<bundles_post_ra>
// kernel: tpu_custom_call.1
= control target key start
LH: loop header
LB: loop body
LE: loop exit
PB: predicated region body
PF: predicated region fallthrough
CT: control target
= control target key end

     0   :  { %v852_v1 = vmov 0   ;;  %s1010_s0 = inlined_call_operand.vmem [shape: f32[64,1], index: 0, kind: input, shape index: {}]   ;;  %s1011_s1 = inlined_call_operand.vmem [shape: f32[1,32], index: 1, kind: input, shape index: {}]   ;;  %s1012_s2 = inlined_call_operand.vmem [shape: f32[32,32], index: 2, kind: input, shape index: {}]   ;;  %s1013_s3 = inlined_call_operand.vmem [shape: f32[1,32], index: 3, kind: input, shape index: {}]   ;;  %s1014_s4 = inlined_call_operand.hbm [shape: f32[8,32], index: 4, kind: output, shape index: {}]  }
   0x1   :  { %v18_v0 = vld [vmem:[%s1010_s0] sm:$0xff]  ;;  %810 = vset.pattern.permute.xlu0 %v852_v1  ;;  %811 = vset.pattern.permute.xlu1 %v852_v1 }
   0x2   :  { %29 = vperm.xlu0 %810, %v18_v0  }
   0x3   :  { %9 = vsyncpa [#allocation3], 0  ;;  %v19_v2 = vld [vmem:[%s1010_s0 + $0x8] sm:$0xff]  ;;  %v22_v3 = vld [vmem:[%s1010_s0 + $0x20] sm:$0xff]  ;;  %v853_v4 = vmov 0.0|0.0   ;;  %vm854_vm0 = vmmov 0  }
   0x4   :  { %763 = vmatprep.subr.bf16.mxu0 %v853_v4  ;;  %v96_v5 = vld [vmem:[%s1012_s2] sm:$0xff]  ;;  %v97_v6 = vld [vmem:[%s1012_s2 + $0x8] sm:$0xff]  ;;  %769 = vmatprep.subr.bf16.mxu1 %v853_v4  ;;  %v24_v8 = vld [vmem:[%s1010_s0 + $0x30] sm:$0xff]  ;;  %v855_v12 = vmov 0.0   ;;  %vm101_vm1 = vcmask 261120  }
   0x5   :  { %v899_v7 = vpack.c.bf16 %v97_v6, %v96_v5  ;;  %v98_v9 = vld [vmem:[%s1012_s2 + $0x10] sm:$0xff]  ;;  %v99_v10 = vld [vmem:[%s1012_s2 + $0x18] sm:$0xff]  ;;  %694 = vmatprep.mubr.msk.f32.mxu0 %vm854_vm0, %v855_v12  ;;  %705 = vmatprep.mubr.msk.f32.mxu1 %vm854_vm0, %v855_v12  ;;  %v927_v13 = vld [vmem:[%s1011_s1] ss:$0 sm:$0xff] }
   0x6   :  { %34 = vperm.xlu0 %810, %v19_v2   ;;  %v913_v11 = vpack.c.bf16 %v99_v10, %v98_v9  ;;  %v932_v14 = vld [vmem:[%s1013_s3] ss:$0 sm:$0xff]  ;;  %v20_v19 = vld [vmem:[%s1010_s0 + $0x10] sm:$0xff]  ;;  %v21_v20 = vld [vmem:[%s1010_s0 + $0x18] sm:$0xff] }
   0x7   :  { %765 = vmatpush3.bf16.msra.mxu0 %v899_v7  ;;  %771 = vmatpush3.bf16.msra.mxu1 %v899_v7  ;;  %v23_v21 = vld [vmem:[%s1010_s0 + $0x28] sm:$0xff]  ;;  %v25_v22 = vld [vmem:[%s1010_s0 + $0x38] sm:$0xff]  ;;  %s856_s0 = smov [#allocation2]  }
   0x8   :  { %766 = vmatprep.subr.bf16.mxu0 %v853_v4  ;;  %772 = vmatprep.subr.bf16.mxu1 %v853_v4  ;;  %s634_s14 = sshll.u32 %s856_s0, 4  ;;  %s635_s14 = int_to_ptr.vmem [resolvable:$true] %s634_s14 }
   0x9   :  { %39 = vperm.xlu1 %811, %v20_v19   ;;  %s828_s15 = scalar_lea.vmem %s635_s14, 128  ;;  %p833_p1 = scmp.lt.s32.totalorder %s635_s14, %s635_s14 }
   0xa   :  { %49 = vperm.xlu0 %810, %v22_v3   ;;  %p829_p0 = scmp.ne.s32.totalorder %s635_s14, %s828_s15  ;;  %p834_p2 = scmp.lt.s32.totalorder %s828_s15, %s828_s15 }
   0xb   :  { %768 = vmatpush3.bf16.msra.mxu0 %v913_v11  ;;  %774 = vmatpush3.bf16.msra.mxu1 %v913_v11 }
   0xc   :  { %775 = vmatprep.subr.bf16.mxu0 %v853_v4  ;;  %781 = vmatprep.subr.bf16.mxu1 %v853_v4  ;;  %p835_p3 = por %p834_p2, %p833_p1 }
   0xd   :  { %44 = vperm.xlu1 %811, %v21_v20  }
   0xe   :  { %59 = vperm.xlu0 %810, %v24_v8   ;;  %p836_p4 = pnand %p835_p3, %p829_p0 }
  0x11   :  { %54 = vperm.xlu1 %811, %v23_v21  }
  0x15   :  { %64 = vperm.xlu1 %811, %v25_v22  }
  0x81   :  { %v30_v15 = vpop.permute.xlu0 %29 }
  0x82   :  { %v73_v16 = vmul.f32 %v927_v13, %v30_v15 }
  0x84   :  { %v88_v17 = vadd.f32 %v932_v14, %v73_v16 }
  0x85   :  { %v35_v23 = vpop.permute.xlu0 %34 }
  0x86   :  { %812 = vtanh.f32 %v88_v17  ;;  %v74_v24 = vmul.f32 %v927_v13, %v35_v23 }
  0x88   :  { %v89_v25 = vadd.f32 %v932_v14, %v74_v24  ;;  %v40_v30 = vpop.permute.xlu1 %39 }
  0x89   :  { %v75_v31 = vmul.f32 %v927_v13, %v40_v30  ;;  %v50_v44 = vpop.permute.xlu0 %49 }
  0x8a   :  { %v77_v45 = vmul.f32 %v927_v13, %v50_v44 }
  0x8b   :  { %v90_v32 = vadd.f32 %v932_v14, %v75_v31 }
  0x8c   :  { %v45_v37 = vpop.permute.xlu1 %44  ;;  %v92_v46 = vadd.f32 %v932_v14, %v77_v45 }
  0x8d   :  { %v76_v38 = vmul.f32 %v927_v13, %v45_v37  ;;  %v60_v58 = vpop.permute.xlu0 %59 }
  0x8e   :  { %v79_v59 = vmul.f32 %v927_v13, %v60_v58 }
  0x8f   :  { %v91_v39 = vadd.f32 %v932_v14, %v76_v38 }
  0x90   :  { %v813_v18 = vpop.eup %812  ;;  %v55_v51 = vpop.permute.xlu1 %54  ;;  %v94_v60 = vadd.f32 %v932_v14, %v79_v59 }
  0x91   :  { %695 = vmatmul.mubr.msk.f32.vlgmr.msra.gmra.mrb[0].mxu0 %vm101_vm1, %v813_v18  ;;  %v78_v52 = vmul.f32 %v927_v13, %v55_v51 }
  0x92   :  { %777 = vmatpush3.bf16.msra.mxu0 %v899_v7  ;;  %716 = vmatprep.mubr.msk.f32.mxu0 %vm854_vm0, %v855_v12 }
  0x93   :  { %778 = vmatprep.subr.bf16.mxu0 %v853_v4  ;;  %v93_v53 = vadd.f32 %v932_v14, %v78_v52 }
  0x94   :  { %v65_v1 = vpop.permute.xlu1 %64 }
  0x95   :  { %v80_v2 = vmul.f32 %v927_v13, %v65_v1 }
  0x96   :  { %780 = vmatpush3.bf16.msra.mxu0 %v913_v11 }
  0x97   :  { %787 = vmatprep.subr.bf16.mxu0 %v853_v4  ;;  %v95_v3 = vadd.f32 %v932_v14, %v80_v2 }
 0x164   :  { %v171_v26 = vpop.f32.mrb[0].mxu0 }
 0x165   :  { %v175_v27 = vadd.f32 %v171_v26, %v89_v25  ;;  %v696_v28 = vpop.f32.mrb[1].mxu0 }
 0x167   :  { %814 = vtanh.f32 %v175_v27 }
 0x171   :  { %v815_v29 = vpop.eup %814 }
 0x172   :  { %706 = vmatmul.mubr.msk.f32.vlgmr.msra.gmra.mrb[0].mxu1 %vm101_vm1, %v815_v29 }
 0x173   :  { %783 = vmatpush3.bf16.msra.mxu1 %v899_v7  ;;  %727 = vmatprep.mubr.msk.f32.mxu1 %vm854_vm0, %v855_v12 }
 0x174   :  { %784 = vmatprep.subr.bf16.mxu1 %v853_v4 }
 0x177   :  { %786 = vmatpush3.bf16.msra.mxu1 %v913_v11 }
 0x178   :  { %793 = vmatprep.subr.bf16.mxu1 %v853_v4 }
 0x245   :  { %v246_v33 = vpop.f32.mrb[0].mxu1 }
 0x246   :  { %v250_v34 = vadd.f32 %v246_v33, %v90_v32  ;;  %v707_v35 = vpop.f32.mrb[1].mxu1 }
 0x248   :  { %816 = vtanh.f32 %v250_v34 }
 0x252   :  { %v817_v36 = vpop.eup %816 }
 0x253   :  { %717 = vmatmul.mubr.msk.f32.vlgmr.msra.gmra.mrb[2].mxu0 %vm101_vm1, %v817_v36 }
 0x254   :  { %789 = vmatpush3.bf16.msra.mxu0 %v899_v7  ;;  %738 = vmatprep.mubr.msk.f32.mxu0 %vm854_vm0, %v855_v12 }
 0x255   :  { %790 = vmatprep.subr.bf16.mxu0 %v853_v4 }
 0x258   :  { %792 = vmatpush3.bf16.msra.mxu0 %v913_v11 }
 0x259   :  { %799 = vmatprep.subr.bf16.mxu0 %v853_v4 }
 0x326   :  { %v321_v40 = vpop.f32.mrb[2].mxu0 }
 0x327   :  { %v325_v41 = vadd.f32 %v321_v40, %v91_v39  ;;  %v718_v42 = vpop.f32.mrb[3].mxu0 }
 0x329   :  { %818 = vtanh.f32 %v325_v41 }
 0x333   :  { %v819_v43 = vpop.eup %818 }
 0x334   :  { %728 = vmatmul.mubr.msk.f32.vlgmr.msra.gmra.mrb[2].mxu1 %vm101_vm1, %v819_v43 }
 0x335   :  { %795 = vmatpush3.bf16.msra.mxu1 %v899_v7  ;;  %749 = vmatprep.mubr.msk.f32.mxu1 %vm854_vm0, %v855_v12 }
 0x336   :  { %796 = vmatprep.subr.bf16.mxu1 %v853_v4 }
 0x339   :  { %798 = vmatpush3.bf16.msra.mxu1 %v913_v11 }
 0x407   :  { %v396_v47 = vpop.f32.mrb[2].mxu1 }
 0x408   :  { %v400_v48 = vadd.f32 %v396_v47, %v92_v46  ;;  %v729_v49 = vpop.f32.mrb[3].mxu1 }
 0x40a   :  { %820 = vtanh.f32 %v400_v48 }
 0x414   :  { %v821_v50 = vpop.eup %820 }
 0x415   :  { %739 = vmatmul.mubr.msk.f32.vlgmr.msra.gmra.mrb[4].mxu0 %vm101_vm1, %v821_v50 }
 0x416   :  { %801 = vmatpush3.bf16.msra.mxu0 %v899_v7  ;;  %760 = vmatprep.mubr.msk.f32.mxu0 %vm854_vm0, %v855_v12 }
 0x417   :  { %802 = vmatprep.subr.bf16.mxu0 %v853_v4 }
 0x41a   :  { %804 = vmatpush3.bf16.msra.mxu0 %v913_v11 }
 0x4e8   :  { %v471_v54 = vpop.f32.mrb[4].mxu0 }
 0x4e9   :  { %v475_v55 = vadd.f32 %v471_v54, %v93_v53  ;;  %v740_v56 = vpop.f32.mrb[5].mxu0 }
 0x4eb   :  { %822 = vtanh.f32 %v475_v55 }
 0x4f5   :  { %v823_v57 = vpop.eup %822 }
 0x4f6   :  { %750 = vmatmul.mubr.msk.f32.vlgmr.msra.gmra.mrb[4].mxu1 %vm101_vm1, %v823_v57 }
 0x5c9   :  { %v546_v61 = vpop.f32.mrb[4].mxu1 }
 0x5ca   :  { %v550_v62 = vadd.f32 %v546_v61, %v94_v60  ;;  %v751_v63 = vpop.f32.mrb[5].mxu1 }
 0x5cc   :  { %824 = vtanh.f32 %v550_v62 }
 0x5d6   :  { %v825_v0 = vpop.eup %824 }
 0x5d7   :  { %761 = vmatmul.mubr.msk.f32.vlgmr.msra.gmra.mrb[6].mxu0 %vm101_vm1, %v825_v0 }
 0x6aa   :  { %v621_v4 = vpop.f32.mrb[6].mxu0 }
 0x6ab   :  { %v625_v5 = vadd.f32 %v621_v4, %v95_v3  ;;  %v762_v6 = vpop.f32.mrb[7].mxu0 }
 0x6ad   :  { %826 = vtanh.f32 %v625_v5 }
 0x6b7   :  { %v827_v7 = vpop.eup %826 }
 0x6b8   :  { %627 = vst.msk [vmem:[#allocation2] sm:$0xff] %vm101_vm1, %v827_v7 }
 0x6b9   :  { %839 = shalt.err (!%p836_p4)
}
 0x6ba   :  { %s840_s18 = scalar_lea.hbm %s1014_s4, 128 }
 0x6bb   :  { %p841_p5 = scmp.ne.s32.totalorder %s1014_s4, %s840_s18  ;;  %p844_p6 = scmp.lt.u32.totalorder %s840_s18, %s1014_s4 }
 0x6bd   :  { %p846_p7 = pnand %p844_p6, %p841_p5 }
 0x6bf   :  { %849 = shalt.err (!%p846_p7)
}
 0x6c0   :  { %637 = dma.vmem_to_hbm [thread:$0]  %s635_s14, 128, %s1014_s4, [#allocation3]  }
 0x6c1   :  { %850 = dma.done.wait [#allocation3], 128  }
 0x6c2   :  { %851 = vsyncadd [#allocation3], 4294967168 }
 0x6c3   :  { %641 = vsyncpa [#allocation3], 1 }

</bundles_post_ra>
